<compile_context>
chip_gen: v7x
topology: tpu7x:2x2x1
jax: 0.10.0
libtpu: 0.0.40
codegen_flags: <defaults>
</compile_context>

<pallas_src>
import numpy as np
import jax
import jax.numpy as jnp
from jax.experimental import pallas as pl
from jax.experimental.pallas import tpu as pltpu


# ------------------------------- kernel --------------------------------------

def _make_ce_kernel(n_rows):
    """Cross-entropy partial-sum kernel for one row tile of one cluster.

    n_rows is the true (static) number of valid rows of this cluster; rows of
    the last, clamped block that fall beyond it are masked out in-kernel.
    """

    def kernel(logits_ref, target_ref, out_ref):
        x = logits_ref[...]                      # (TN, C) native dtype (f32/bf16)
        tgt = target_ref[...]                    # (TN, 1) int32
        tn, c = x.shape

        # gather logits[row, target[row]] via lane-iota compare (native dtype,
        # so bf16 inputs use packed half-width VALU ops).
        col_ids = jax.lax.broadcasted_iota(jnp.int32, (tn, c), 1)
        sel = col_ids == tgt
        picked = jnp.sum(jnp.where(sel, x, jnp.zeros_like(x)),
                         axis=1, keepdims=True).astype(jnp.float32)   # (TN, 1)

        # numerically stable logsumexp; exp/sum accumulation stays in f32.
        m = jnp.max(x, axis=1, keepdims=True).astype(jnp.float32)     # (TN, 1)
        p = jnp.exp(x.astype(jnp.float32) - m)
        lse = m + jnp.log(jnp.sum(p, axis=1, keepdims=True))

        # mask rows of the (clamped) boundary block that are past n_rows.
        row_ids = (pl.program_id(0) * tn
                   + jax.lax.broadcasted_iota(jnp.int32, (tn, 1), 0))
        loss = jnp.where(row_ids < n_rows, lse - picked, 0.0)

        # one partial sum per grid step, stored as a full unmasked (8,128) block
        partial = jnp.sum(loss)
        out_ref[...] = jnp.full(out_ref.shape, partial, jnp.float32)

    return kernel


# ------------------------------ wrappers --------------------------------------

def _round_up(x, m):
    return ((x + m - 1) // m) * m


def _sublane_multiple(itemsize):
    # dtype-native sublane packing: 8 rows for 4-byte, 16 for 2-byte, 32 for 1-byte
    return {4: 8, 2: 16, 1: 32}.get(itemsize, 8)


# Working-set budget accounts for the input double buffer PLUS the kernel's
# full-tile temporaries (f32 upcast, int32 iota, select, exp, ...) ~ 6 f32
# copies of the tile.  24 MiB fits under the 48 MiB scoped limit we set on
# every generation (v5e/v6e: 128 MiB physical, v7x: 64 MiB per TensorCore).
_VMEM_BUDGET = 24 * 1024 * 1024
_VMEM_LIMIT = 48 * 1024 * 1024


def _auto_tile_rows(n_cols, itemsize, sub):
    bytes_per_row = 2 * n_cols * itemsize + 6 * n_cols * 4
    tn = _VMEM_BUDGET // max(1, bytes_per_row)
    return max(sub, (tn // sub) * sub)


def cluster_ce_sum(logits, targets, *, tile_rows=None):
    """sum_i CE(logits[i, :], targets[i]) for one cluster, via a row-tiled kernel.

    logits : (N, C) f32/bf16 — used at its native width, no column padding.
    targets: (N,) int32 class indices inside this cluster.
    """
    n, c = logits.shape
    targets = targets.reshape(n, 1).astype(jnp.int32)

    itemsize = logits.dtype.itemsize
    sub = _sublane_multiple(itemsize)

    if tile_rows is None:
        tile_rows = _auto_tile_rows(c, itemsize, sub)
    else:
        tile_rows = max(sub, (tile_rows // sub) * sub)

    # keep >= 2 grid steps when there is enough work so v7x's two TensorCores
    # both get row tiles (row axis is "parallel").
    if n > sub:
        tile_rows = min(tile_rows, _round_up(-(-n // 2), sub))
    if tile_rows >= n:
        tile_rows = n            # single block; block dim == full array dim is legal

    num_tiles = pl.cdiv(n, tile_rows)
    kernel = _make_ce_kernel(n)

    cost = pl.CostEstimate(
        flops=6 * n * c,
        transcendentals=n * c,
        bytes_accessed=n * c * itemsize + n * 4 + num_tiles * 8 * 128 * 4,
    )

    per_tile = pl.pallas_call(
        kernel,
        out_shape=jax.ShapeDtypeStruct((num_tiles, 8, 128), jnp.float32),
        grid_spec=pltpu.PrefetchScalarGridSpec(
            num_scalar_prefetch=0,
            grid=(num_tiles,),
            in_specs=[
                pl.BlockSpec((tile_rows, c), lambda i: (i, 0)),
                pl.BlockSpec((tile_rows, 1), lambda i: (i, 0)),
            ],
            out_specs=pl.BlockSpec((1, 8, 128), lambda i: (i, 0, 0)),
        ),
        compiler_params=pltpu.CompilerParams(
            dimension_semantics=("parallel",),
            vmem_limit_bytes=_VMEM_LIMIT,
        ),
        cost_estimate=cost,
    )(logits, targets)

    # tiny final reduction over num_tiles partials (element [0,0] of each block)
    return jnp.sum(per_tile[:, 0, 0])


def adaptive_loss(inputs, target, cutoff, *, tile_rows=None):
    """Forward pass of AdaptiveLoss.

    inputs: [head_logits (B, cutoff[0]+n_tails), tail_logits_1 (n_1, c_1) or None, ...]
    target: (B,) int vector with values in [0, cutoff[-1]).
    Returns sum over clusters of CrossEntropyLoss(size_average=False) / B.
    """
    assert inputs[0] is not None
    batch_size = inputs[0].shape[0]
    target = jnp.asarray(target, jnp.int32)

    # Device-side target remap with static shapes (no host sync):
    #   head targets via jnp.where; tail targets via size-bounded nonzero.
    # TODO(synk): jnp.nonzero(size=n_i) assumes the runtime mask count equals
    # each tail's row count (guaranteed by the adaptive-softmax head that
    # produced the tail logits); the original module's range assert is dropped
    # because it would force a device->host sync.
    head_tgt = target
    clusters = []
    for i in range(len(cutoff) - 1):
        mask = (target >= cutoff[i]) & (target < cutoff[i + 1])
        head_tgt = jnp.where(mask, cutoff[0] + i, head_tgt)
        if inputs[i + 1] is not None:
            n_i = inputs[i + 1].shape[0]
            idx = jnp.nonzero(mask, size=n_i, fill_value=0)[0]
            clusters.append((inputs[i + 1], target[idx] - cutoff[i]))
    clusters.insert(0, (inputs[0], head_tgt))

    # One pallas_call per cluster (2-5 clusters in practice): each streams its
    # logits at native width straight from HBM — no padding, no concat copy.
    total = 0.0
    for logits, tgt in clusters:
        total = total + cluster_ce_sum(logits, tgt, tile_rows=tile_rows)
    return total / batch_size


# ------------------------------ reference -------------------------------------

def _remap_target_np(target_np, cutoff):
    new_target = [target_np.copy()]
    for i in range(len(cutoff) - 1):
        mask = (target_np >= cutoff[i]) & (target_np < cutoff[i + 1])
        new_target[0][mask] = cutoff[0] + i
        if mask.sum() > 0:
            new_target.append(target_np[mask] - cutoff[i])
        else:
            new_target.append(None)
    return new_target


def _ce_sum_ref(logits, targets):
    logits = np.asarray(logits, dtype=np.float64)
    targets = np.asarray(targets)
    m = logits.max(axis=1, keepdims=True)
    lse = m[:, 0] + np.log(np.exp(logits - m).sum(axis=1))
    return float((lse - logits[np.arange(len(targets)), targets]).sum())


def adaptive_loss_ref(inputs, target_np, cutoff):
    batch_size = inputs[0].shape[0]
    targets = _remap_target_np(np.asarray(target_np), cutoff)
    out = 0.0
    for i in range(len(inputs)):
        if inputs[i] is not None and targets[i] is not None:
            out += _ce_sum_ref(inputs[i], targets[i])
    return out / batch_size


# -------------------------------- main -----------------------------------------

if __name__ == "__main__":
    # adaptive-softmax config: head covers classes [0, 8), two tail clusters
    # cover [8, 16) and [16, 32).  Head logits have 8 + 2 cluster columns.
    cutoff = [8, 16, 32]
    batch = 16

    key = jax.random.PRNGKey(0)
    k_t, k_head, k_t1, k_t2 = jax.random.split(key, 4)

    target = jax.random.randint(k_t, (batch,), 0, cutoff[-1], dtype=jnp.int32)
    target_np = np.asarray(target)   # demo-only: the upstream adaptive-softmax
                                     # head decides the data-dependent tail rows

    head_cols = cutoff[0] + (len(cutoff) - 1)
    head_logits = jax.random.normal(k_head, (batch, head_cols), jnp.float32)

    tail_keys = [k_t1, k_t2]
    inputs = [head_logits]
    for i in range(len(cutoff) - 1):
        n_i = int(((target_np >= cutoff[i]) & (target_np < cutoff[i + 1])).sum())
        c_i = cutoff[i + 1] - cutoff[i]
        if n_i > 0:
            inputs.append(jax.random.normal(tail_keys[i], (n_i, c_i), jnp.float32))
        else:
            inputs.append(None)

    # tile_rows=None auto-sizes from the VMEM budget (the two-TC cap still
    # gives a multi-step row grid for the head at this tiny size).
    loss = adaptive_loss(inputs, target, cutoff)
    loss = jax.block_until_ready(loss)

    ref = adaptive_loss_ref(
        [None if x is None else np.asarray(x) for x in inputs], target_np, cutoff
    )
    assert abs(float(loss) - ref) < 1e-3, (float(loss), ref)
    print("KERNEL_OK")
</pallas_src>

<mosaic_0001>
module attributes {stable_mosaic.version = 11 : i64} {
  func.func @kernel(%arg0: i32, %arg1: memref<8x10xf32, #tpu.memory_space<vmem>>, %arg2: memref<8x1xi32, #tpu.memory_space<vmem>>, %arg3: memref<1x8x128xf32, #tpu.memory_space<vmem>>) attributes {dimension_semantics = [#tpu.dimension_semantics<parallel>], iteration_bounds = array<i64: 2>, scalar_prefetch = 0 : i64, scratch_operands = 0 : i64, tpu.core_type = #tpu.core_type<tc>, window_params = [{transform_indices = @transform_0, window_bounds = array<i64: 8, 10>}, {transform_indices = @transform_1, window_bounds = array<i64: 8, 1>}, {transform_indices = @transform_2, window_bounds = array<i64: 1, 8, 128>}]} {
    %c0 = arith.constant 0 : index
    %c0_0 = arith.constant 0 : index
    %0 = vector.load %arg1[%c0, %c0_0] : memref<8x10xf32, #tpu.memory_space<vmem>>, vector<8x10xf32>
    %c0_1 = arith.constant 0 : index
    %c0_2 = arith.constant 0 : index
    %1 = vector.load %arg2[%c0_1, %c0_2] : memref<8x1xi32, #tpu.memory_space<vmem>>, vector<8x1xi32>
    %2 = tpu.iota {dimensions = array<i32: 1>} : vector<8x10xi32>
    %3 = vector.broadcast %1 : vector<8x1xi32> to vector<8x10xi32>
    %4 = arith.cmpi eq, %2, %3 : vector<8x10xi32>
    %cst = arith.constant 0.000000e+00 : f32
    %5 = vector.broadcast %cst : f32 to vector<8x10xf32>
    %6 = arith.select %4, %0, %5 : vector<8x10xi1>, vector<8x10xf32>
    %cst_3 = arith.constant dense<0.000000e+00> : vector<8xf32>
    %7 = vector.multi_reduction <add>, %6, %cst_3 [1] : vector<8x10xf32> to vector<8xf32>
    %8 = vector.shape_cast %7 : vector<8xf32> to vector<8x1xf32>
    %cst_4 = arith.constant dense<0xFF800000> : vector<8xf32>
    %9 = vector.multi_reduction <maximumf>, %0, %cst_4 [1] : vector<8x10xf32> to vector<8xf32>
    %10 = vector.shape_cast %9 : vector<8xf32> to vector<8x1xf32>
    %11 = vector.broadcast %10 : vector<8x1xf32> to vector<8x10xf32>
    %12 = arith.subf %0, %11 : vector<8x10xf32>
    %13 = math.exp %12 : vector<8x10xf32>
    %cst_5 = arith.constant dense<0.000000e+00> : vector<8xf32>
    %14 = vector.multi_reduction <add>, %13, %cst_5 [1] : vector<8x10xf32> to vector<8xf32>
    %15 = vector.shape_cast %14 : vector<8xf32> to vector<8x1xf32>
    %16 = math.log %15 : vector<8x1xf32>
    %17 = arith.addf %10, %16 : vector<8x1xf32>
    %c8_i32 = arith.constant 8 : i32
    %18 = arith.muli %arg0, %c8_i32 : i32
    %19 = tpu.iota {dimensions = array<i32: 0>} : vector<8x1xi32>
    %20 = vector.broadcast %18 : i32 to vector<8x1xi32>
    %21 = arith.addi %20, %19 : vector<8x1xi32>
    %c16_i32 = arith.constant 16 : i32
    %22 = vector.broadcast %c16_i32 : i32 to vector<8x1xi32>
    %23 = arith.cmpi slt, %21, %22 : vector<8x1xi32>
    %24 = arith.subf %17, %8 : vector<8x1xf32>
    %cst_6 = arith.constant 0.000000e+00 : f32
    %25 = vector.broadcast %cst_6 : f32 to vector<8x1xf32>
    %26 = arith.select %23, %24, %25 : vector<8x1xi1>, vector<8x1xf32>
    %27 = vector.shape_cast %26 : vector<8x1xf32> to vector<1x8x1xf32>
    %cst_7 = arith.constant dense<0.000000e+00> : vector<1xf32>
    %28 = vector.multi_reduction <add>, %27, %cst_7 [1, 2] : vector<1x8x1xf32> to vector<1xf32>
    %29 = vector.shape_cast %28 : vector<1xf32> to vector<1x1x1xf32>
    %30 = vector.extract %29[0, 0, 0] : f32 from vector<1x1x1xf32>
    %31 = vector.broadcast %30 : f32 to vector<1x8x128xf32>
    %c0_8 = arith.constant 0 : index
    %c0_9 = arith.constant 0 : index
    %c0_10 = arith.constant 0 : index
    %32 = vector.load %arg3[%c0_8, %c0_9, %c0_10] : memref<1x8x128xf32, #tpu.memory_space<vmem>>, vector<1x8x128xf32>
    tpu.vector_store %arg3[%c0_8, %c0_9, %c0_10], %31 {strides = array<i32>} : memref<1x8x128xf32, #tpu.memory_space<vmem>>, vector<1x8x128xf32>,
    return
  }
  func.func @transform_0(%arg0: i32) -> (i32, i32) {
    %c0_i32 = arith.constant 0 : i32
    %c0_i32_0 = arith.constant 0 : i32
    return %arg0, %c0_i32 : i32, i32
  }
  func.func @transform_1(%arg0: i32) -> (i32, i32) {
    %c0_i32 = arith.constant 0 : i32
    %c0_i32_0 = arith.constant 0 : i32
    return %arg0, %c0_i32 : i32, i32
  }
  func.func @transform_2(%arg0: i32) -> (i32, i32, i32) {
    %c0_i32 = arith.constant 0 : i32
    %c0_i32_0 = arith.constant 0 : i32
    %c0_i32_1 = arith.constant 0 : i32
    return %arg0, %c0_i32, %c0_i32_0 : i32, i32, i32
  }
}

</mosaic_0001>

<bundles_post_ra>
// kernel: tpu_custom_call.1
= control target key start
LH: loop header
LB: loop body
LE: loop exit
PB: predicated region body
PF: predicated region fallthrough
CT: control target
= control target key end

     0   :  { %7 = vsyncpa [#allocation3], 0  ;;  %s534_s0 = inlined_call_operand.vmem [shape: f32[16,10], index: 0, kind: input, shape index: {}]   ;;  %s535_s1 = inlined_call_operand.vmem [shape: s32[16,1], index: 1, kind: input, shape index: {}]   ;;  %s536_s2 = inlined_call_operand.hbm [shape: f32[2,8,128], index: 2, kind: output, shape index: {}]  }
   0x1   :  { %9 = vsyncpa [#allocation3 + $0x1], 0  ;;  %s427_s9 = smov 0   ;;  %s429_s10 = smov 0  }
   0x2   :  { %s431_s11 = smov 0   ;;  %s433_s12 = smov 0  }
   0x3 LB: > { %s448_s13 = sadd.s32 4294967295, %s408_s12   ;;  %s287_s14 = sadd.s32 4294967294, %s408_s12   ;;  %s408_s12 = sphi %s433_s12, %s542_s12   ;;  %s404_s11 = sphi %s431_s11, %s541_s11   ;;  %s400_s10 = sphi %s429_s10, %s540_s10   ;;  %s396_s9 = sphi %s427_s9, %s539_s9  }
   0x4   : > { %s452_s15 = sadd.s32 1, %s408_s12   ;;  %s74_s16 = sadd.s32 1, %s404_s11 }
   0x5   : > { %s71_s17 = ssub.s32 %s408_s12, %s452_s15  ;;  %p84_p0 = scmp.ne.s32.totalorder %s404_s11, %s400_s10 }
   0x6   : > { %p72_p1 = scmp.eq.s32.totalorder %s71_s17, 0  ;;  %p85_p2 = scmp.eq.s32.totalorder %s448_s13, 1 }
   0x7   : > { %p90_p3 = scmp.ne.s32.totalorder %s400_s10, %s396_s9  ;;  %p91_p4 = scmp.eq.s32.totalorder %s287_s14, 1 }
   0x8   : > { %s463_s18 = scalar_select %p72_p1, %s404_s11, %s74_s16  }
   0x9   : > { %p465_p5 = por %p85_p2, %p84_p0  ;;  %p469_p6 = por %p91_p4, %p90_p3 }
   0xa   : > { %p290_p7 = scmp.ge.s32.totalorder %s408_s12, 1  ;;  %p123_p8 = scmp.lt.s32.totalorder %s408_s12, 3 }
   0xc   : > { %p124_p9 = pnand %p290_p7, %p123_p8 }
   0xd   : > { %p148_p10 = scmp.lt.s32.totalorder (!%p124_p9), %s448_s13, 1  ;;  %v410_v0 = vmov (!%p124_p9), 0   ;;  %vm165_vm0 = vcmask (!%p124_p9), 80896   ;;  %v158_v7 = vlaneseq (!%p124_p9)  ;;  %s294_s29 = sshll.u32 (!%p124_p9), %s448_s13, 3  ;;  %vm189_vm3 = vcmask (!%p124_p9), 7168  }
   0xe   : > { %127 = sbr.rel (%p124_p9) target bundleno = 565 (0x235), region = 28  ;;  %341 = vset.pattern.permute.xlu0 (!%p124_p9), %v410_v0  ;;  %v184_v16 = vstv (!%p124_p9), %s294_s29  ;;  %s145_s30 = sand.u32 (!%p124_p9), 1, %s400_s10  }
   0xf   : > { %v159_v8 = vand.u32 (!%p124_p9), 127, %v158_v7  ;;  %v183_v15 = vshrl.u32 (!%p124_p9), %v158_v7, 7  ;;  %s291_s3 = sshll.u32 (!%p124_p9), %s145_s30, 3  ;;  %s296_s6 = sshll.u32 (!%p124_p9), %s448_s13, 7 }
  0x10   : > { %s147_s4 = scalar_lea.vmem (!%p124_p9), [#allocation2], %s291_s3  ;;  %s494_s16 = scalar_lea.hbm (!%p124_p9), %s536_s2, %s296_s6 }
  0x11   : > { %v185_v18 = vadd.s32 (!%p124_p9), %v184_v16, %v183_v15  ;;  %s216_s5 = sshll.u32 (!%p124_p9), %s147_s4, 4  ;;  %s203_s17 = scalar_lea.sflag (!%p124_p9), [#allocation3], %s145_s30  ;;  %s489_s5 = int_to_ptr.vmem [resolvable:$true] %s216_s5 }
  0x13   : > { %vm186_vm2 = vcmp.lt.s32.totalorder (!%p124_p9), %v185_v18, 16 }
  0x15   : > { %s149_s21 = scalar_select %p148_p10, %s448_s13, 1 }
  0x16   : > { %s411_s13 = smov [#allocation2]  }
  0x17   : > { %s292_s22 = sshll.u32 %s149_s21, 3  ;;  %s346_s21 = scalar_lea.vmem %s489_s5, 128 }
  0x18   : > { %s151_s25 = scalar_lea.vmem %s534_s0, %s292_s22  ;;  %s155_s28 = scalar_lea.vmem %s535_s1, %s292_s22 }
  0x19   : > { %v156_v1 = vld [vmem:[%s151_s25] sm:$0xff]  ;;  %p347_p11 = scmp.ne.s32.totalorder %s489_s5, %s346_s21  ;;  %s350_s22 = sshll.u32 %s411_s13, 4  ;;  %s351_s22 = int_to_ptr.vmem [resolvable:$false] %s350_s22 }
  0x1a   : > { %v169_v2 = vsel %vm165_vm0, %v156_v1, -inf  ;;  %v157_v3 = vld [vmem:[%s155_s28] sm:$0xff]  ;;  %s352_s23 = scalar_lea.vmem %s351_s22, 256  ;;  %p353_p0 = scmp.lt.s32.totalorder %s489_s5, %s351_s22 }
  0x1b   : > { %170 = vmax.xlane.f32.xlu0 %v169_v2  ;;  %p348_p12 = pnand %p347_p11, %p465_p5  ;;  %p354_p1 = scmp.lt.s32.totalorder %s352_s23, %s346_s21 }
  0x1d   : > { %p349_p13 = pneg %p348_p12  ;;  %p355_p2 = por %p354_p1, %p353_p0 }
  0x1f   : > { %p356_p3 = pnand %p355_p2, %p349_p13 }
  0x31   : > { %161 = vperm.xlu0 %341, %v157_v3  }
  0xa8   : > { %v171_v4 = vpop.xlane.xlu0 %170 }
  0xa9   : > { %v172_v5 = vsub.f32 %v156_v1, %v171_v4 }
  0xab   : > { %v173_v6 = vmul.f32 1.442695, %v172_v5 }
  0xad   : > { %342 = vpow2.f32 %v173_v6 }
  0xb0   : > { %v162_v9 = vpop.permute.xlu0 %161 }
  0xb1   : > { %vm163_vm1 = vcmp.eq.s32.totalorder %v159_v8, %v162_v9 }
  0xb2   : > { %v164_v11 = vsel %vm163_vm1, %v156_v1, 0.0 }
  0xb3   : > { %v166_v13 = vsel %vm165_vm0, %v164_v11, 0.0 }
  0xb7   : > { %v343_v10 = vpop.eup %342 }
  0xb8   : > { %v175_v12 = vsel %vm165_vm0, %v343_v10, 0.0 }
  0xb9   : > { %176 = vadd.xlane.f32.xlu1 %v175_v12 }
  0xbd   : > { %167 = vadd.xlane.f32.xlu1 %v166_v13 }
 0x146   : > { %v177_v14 = vpop.xlane.xlu1 %176 }
 0x147   : > { %344 = vlog2.f32 %v177_v14 }
 0x14a   : > { %v168_v20 = vpop.xlane.xlu1 %167 }
 0x151   : > { %v345_v17 = vpop.eup %344 }
 0x152   : > { %v179_v19 = vmul.f32 0.6931472, %v345_v17 }
 0x154   : > { %v180_v21 = vadd.f32 %v179_v19, %v171_v4 }
 0x156   : > { %v187_v22 = vsub.f32 %v180_v21, %v168_v20 }
 0x158   : > { %v188_v23 = vsel %vm186_vm2, %v187_v22, 0.0 }
 0x159   : > { %v190_v24 = vsel %vm189_vm3, %v188_v23, 0.0 }
 0x15a   : > { %191 = vadd.xlane.f32.xlu1 %v190_v24 }
 0x1e7   : > { %v192_v25 = vpop.xlane.xlu1 %191 }
 0x1e8   : > { %v193_v26 = vrot.slane %v192_v25, 4 }
 0x1ea   : > { %v194_v27 = vadd.f32 %v193_v26, %v192_v25 }
 0x1ec   : > { %v195_v28 = vrot.slane %v194_v27, 2 }
 0x1ee   : > { %v196_v29 = vadd.f32 %v195_v28, %v194_v27 }
 0x1f0   : > { %v197_v30 = vrot.slane %v196_v29, 1 }
 0x1f2   : > { %v198_v31 = vadd.f32 %v197_v30, %v196_v29 }
 0x1f4   : > { %299 = vpush %v198_v31 }
 0x225   : > { %s300_s7 = spop %299 }
 0x226   : > { %v200_v32 = vstv %s300_s7 }
 0x227   : > { %201 = vst [vmem:[%s147_s4] sm:$0xff] %v200_v32 }
 0x228   : > { %359 = shalt.err (!%p356_p3)
}
 0x229   : > { %s360_s24 = scalar_lea.hbm %s494_s16, 128  ;;  %s364_s27 = scalar_lea.hbm %s536_s2, 256 }
 0x22a   : > { %p361_p4 = scmp.ne.s32.totalorder %s494_s16, %s360_s24  ;;  %p365_p9 = scmp.lt.u32.totalorder %s494_s16, %s536_s2 }
 0x22b   : > { %p366_p10 = scmp.lt.u32.totalorder %s364_s27, %s360_s24  ;;  %p368_p12 = scmp.lt.u32.totalorder %s360_s24, %s494_s16 }
 0x22c   : > { %p362_p7 = pnand %p361_p4, %p465_p5 }
 0x22d   : > { %p367_p11 = por %p366_p10, %p365_p9 }
 0x22e   : > { %p363_p8 = pneg %p362_p7 }
 0x22f   : > { %p369_p13 = por %p368_p12, %p367_p11 }
 0x231   : > { %p370_p0 = pnand %p369_p13, %p363_p8 }
 0x233   : > { %373 = shalt.err (!%p370_p0)
}
 0x234   : > { %301 = dma.vmem_to_hbm [thread:$0]  (%p465_p5), %s489_s5, 128, %s494_s16, %s203_s17  }
 0x235 PF: > { %p307_p1 = scmp.ge.s32.totalorder %s408_s12, 2  ;;  %s228_s30 = sand.u32 1, %s396_s9  }
 0x236   : > { %s229_s3 = scalar_lea.sflag [#allocation3], %s228_s30 }
 0x237   : > { %p304_p2 = pnand %p307_p1, %p469_p6 }
 0x239   : > { %391 = dma.done.wait (!%p304_p2), %s229_s3, 128  }
 0x23a   : > { %393 = vsyncadd (!%p304_p2), %s229_s3, 4294967168  ;;  %p12_p3 = scmp.ge.s32.totalorder %s452_s15, 4   ;;  %s539_s9 = smov %s400_s10 }
 0x23b   : > { %s540_s10 = smov %s404_s11  ;;  %s541_s11 = smov %s463_s18 }
 0x23c   : > { %s542_s12 = smov %s452_s15  ;;  %14 = sbr.rel (!%p12_p3) target bundleno = 3 (0x3), region = 66 }
 0x243   :  { %234 = vsyncpa [#allocation3], 1 }
 0x244   :  { %236 = vsyncpa [#allocation3 + $0x1], 1 }

</bundles_post_ra>
